<compile_context>
chip_gen: v5e
topology: v5e:2x2
jax: 0.10.0
libtpu: 0.0.40
codegen_flags: <defaults>
</compile_context>

<pallas_src>
import jax
import jax.numpy as jnp
from jax.experimental import pallas as pl
from jax.experimental.pallas import tpu as pltpu


def value_attention_kernel(col_ref, tgt_ref, mask_ref, w_ref, cat_ref, att_ref):
    # One grid step == TB batch rows.
    TB, L, D = tgt_ref.shape
    H = w_ref.shape[1]

    col = col_ref[...]          # (TB, D)   f32 (kept f32 so cat left half is exact)
    tgt = tgt_ref[...]          # (TB, L, D)
    mask = mask_ref[...]        # (TB, L)   f32 0/1
    w = w_ref[...]              # (D, H)    pre-transposed weight

    # ---- Projections on the MXU, full-width M -------------------------------
    # col_output_transformed = relu(col @ W^T)                      -> (TB, H)
    c = jnp.dot(col.astype(w.dtype), w, preferred_element_type=jnp.float32)
    c = jnp.maximum(c, 0.0)

    # target_output_transformed = relu((mask * target) @ W^T)       -> (TB, L, H)
    # Exact PyTorch mask_and_acv semantics (mask applied before the linear).
    tgt_m = tgt * mask[:, :, None].astype(tgt.dtype)
    # Leading-dim collapse (TB, L, D) -> (TB*L, D) is layout-free for L % 8 == 0.
    t = jnp.dot(tgt_m.reshape(TB * L, D), w, preferred_element_type=jnp.float32)
    t = jnp.maximum(t, 0.0).reshape(TB, L, H)

    # ---- Attention logits + softmax over L (f32, exact) ---------------------
    # logits[b, l] = sum_h c[b, h] * t[b, l, h]   (VPU multiply + lane reduce)
    logits = jnp.sum(c[:, None, :] * t, axis=-1)                  # (TB, L)
    m_max = jnp.max(logits, axis=-1, keepdims=True)
    p = jnp.exp(logits - m_max)
    attn = p / jnp.sum(p, axis=-1, keepdims=True)                 # (TB, L)

    # ---- attention_output = sum_l attn[b,l] * target[b,l,:]  (unmasked) -----
    att = jnp.sum(attn[:, :, None] * tgt.astype(jnp.float32), axis=1)  # (TB, D)

    # ---- Outputs: cat = [col, att] written directly (no wrapper concat) -----
    cat_ref[:, :D] = col.astype(cat_ref.dtype)
    cat_ref[:, D:] = att.astype(cat_ref.dtype)
    att_ref[...] = att.astype(att_ref.dtype)


def _choose_batch_tile(batch, seq_len, feat, dtype_bytes=4,
                       vmem_budget_bytes=4 << 20, max_tile=256):
    """Largest batch tile that (a) divides B, (b) keeps the double-buffered
    target block within a conservative VMEM budget (fits v5e's 16 MiB default
    scoped VMEM and v7x's 64 MiB physical VMEM with room to spare), and
    (c) is a multiple of 8 sublanes when possible."""
    lane_feat = -(-feat // 128) * 128                      # lanes pad to 128
    per_row = 2 * seq_len * lane_feat * dtype_bytes        # 2x = double buffer
    cap = max(1, min(batch, max_tile, vmem_budget_bytes // per_row))
    best, best8 = 1, 0
    for tb in range(1, cap + 1):
        if batch % tb == 0:
            best = tb
            if tb % 8 == 0:
                best8 = tb
    return best8 if best8 else best


def value_attention(col_output, target_output, target_mask, weight,
                    matmul_dtype=jnp.float32):
    """Pallas wrapper matching ValueAttention.forward semantics.

    matmul_dtype=jnp.bfloat16 is only worth it when target_output is already
    bf16 in HBM (a standalone wrapper astype adds a full HBM pass); default
    f32 keeps faithful numerics.  col/mask stay f32 regardless so the
    cat_output left half and the softmax math are exact.
    """
    B, D = col_output.shape
    _, L, _ = target_output.shape
    H = weight.shape[0]

    TB = _choose_batch_tile(B, L, D, dtype_bytes=jnp.dtype(matmul_dtype).itemsize)
    grid = (B // TB,)

    # Wrapper-side layout plumbing (free / one-time XLA ops).
    col = col_output.astype(jnp.float32)            # (B, D)
    tgt = target_output.astype(matmul_dtype)        # (B, L, D)  no-op for f32
    mask = target_mask.astype(jnp.float32)          # (B, L)
    w_t = weight.astype(matmul_dtype).T             # (D, H) one-time transpose

    # TODO(synk): for L not a multiple of 8 the in-kernel leading-dim reshape
    # is no longer a pure layout no-op; pad L in the wrapper if that case matters.
    cat, att = pl.pallas_call(
        value_attention_kernel,
        grid=grid,
        in_specs=[
            pl.BlockSpec((TB, D), lambda i: (i, 0)),        # col    -> (TB, D)
            pl.BlockSpec((TB, L, D), lambda i: (i, 0, 0)),  # target -> (TB, L, D)
            pl.BlockSpec((TB, L), lambda i: (i, 0)),        # mask   -> (TB, L)
            pl.BlockSpec((D, H), lambda i: (0, 0)),         # weight (resident)
        ],
        out_specs=(
            pl.BlockSpec((TB, 2 * D), lambda i: (i, 0)),    # cat_output
            pl.BlockSpec((TB, D), lambda i: (i, 0)),        # attention_output
        ),
        out_shape=(
            jax.ShapeDtypeStruct((B, 2 * D), jnp.float32),
            jax.ShapeDtypeStruct((B, D), jnp.float32),
        ),
        compiler_params=pltpu.CompilerParams(
            dimension_semantics=("parallel",)),
    )(col, tgt, mask, w_t)
    return cat, att


def value_attention_ref(col_output, target_output, target_mask, weight):
    """Plain-JAX reference mirroring the PyTorch module (for verification)."""
    mask_f = target_mask.astype(jnp.float32)
    c = jax.nn.relu(col_output @ weight.T)
    t = jax.nn.relu((target_output * mask_f[:, :, None]) @ weight.T)
    logits = jnp.sum(c[:, None, :] * t, axis=-1)
    attn = jax.nn.softmax(logits, axis=1)
    att = jnp.sum(attn[:, :, None] * target_output, axis=1)
    cat = jnp.concatenate([col_output, att], axis=1)
    return cat, att


if __name__ == "__main__":
    B, L = 2, 8
    input_size = 32     # D
    hidden_size = 32    # H

    key = jax.random.PRNGKey(0)
    k_col, k_tgt, k_mask, k_w = jax.random.split(key, 4)

    def snap_bf16(x):
        # Round test inputs to bf16-representable values (kept as f32) so the
        # MXU f32-matmul result is identical regardless of how many bf16
        # passes the hardware/compiler uses -> the check can be tight.
        return x.astype(jnp.bfloat16).astype(jnp.float32)

    col_output = snap_bf16(jax.random.normal(k_col, (B, input_size), dtype=jnp.float32))
    target_output = snap_bf16(jax.random.normal(k_tgt, (B, L, input_size), dtype=jnp.float32))
    target_mask = (jax.random.uniform(k_mask, (B, L)) > 0.3).astype(jnp.int32)
    # nn.Linear(input_size, hidden_size, bias=False): weight shape (H, D)
    weight = snap_bf16(jax.random.normal(k_w, (hidden_size, input_size), dtype=jnp.float32)
                       * (1.0 / jnp.sqrt(input_size)))

    cat_out, att_out = value_attention(col_output, target_output, target_mask, weight)
    cat_out = jax.block_until_ready(cat_out)
    att_out = jax.block_until_ready(att_out)

    cat_exp, att_exp = value_attention_ref(col_output, target_output, target_mask, weight)

    assert cat_out.shape == (B, 2 * input_size)
    assert att_out.shape == (B, input_size)
    # Exact reciprocal + exact masking -> tight f32-level tolerance.
    assert jnp.allclose(cat_out, cat_exp, atol=1e-5, rtol=1e-5), \
        float(jnp.max(jnp.abs(cat_out - cat_exp)))
    assert jnp.allclose(att_out, att_exp, atol=1e-5, rtol=1e-5), \
        float(jnp.max(jnp.abs(att_out - att_exp)))

    print("KERNEL_OK")
</pallas_src>

<mosaic_0001>
module attributes {stable_mosaic.version = 11 : i64} {
  func.func @value_attention_kernel(%arg0: i32, %arg1: memref<2x32xf32, #tpu.memory_space<vmem>>, %arg2: memref<2x8x32xf32, #tpu.memory_space<vmem>>, %arg3: memref<2x8xf32, #tpu.memory_space<vmem>>, %arg4: memref<32x32xf32, #tpu.memory_space<vmem>>, %arg5: memref<2x64xf32, #tpu.memory_space<vmem>>, %arg6: memref<2x32xf32, #tpu.memory_space<vmem>>) attributes {dimension_semantics = [#tpu.dimension_semantics<parallel>], iteration_bounds = array<i64: 1>, scalar_prefetch = 0 : i64, scratch_operands = 0 : i64, tpu.core_type = #tpu.core_type<tc>, window_params = [{transform_indices = @transform_0, window_bounds = array<i64: 2, 32>}, {transform_indices = @transform_1, window_bounds = array<i64: 2, 8, 32>}, {transform_indices = @transform_2, window_bounds = array<i64: 2, 8>}, {pipeline_mode = #tpu.pipeline_mode<synchronous>, transform_indices = @transform_3, window_bounds = array<i64: 32, 32>}, {transform_indices = @transform_4, window_bounds = array<i64: 2, 64>}, {transform_indices = @transform_5, window_bounds = array<i64: 2, 32>}]} {
    %c0 = arith.constant 0 : index
    %c0_0 = arith.constant 0 : index
    %0 = vector.load %arg1[%c0, %c0_0] : memref<2x32xf32, #tpu.memory_space<vmem>>, vector<2x32xf32>
    %c0_1 = arith.constant 0 : index
    %c0_2 = arith.constant 0 : index
    %c0_3 = arith.constant 0 : index
    %1 = vector.load %arg2[%c0_1, %c0_2, %c0_3] : memref<2x8x32xf32, #tpu.memory_space<vmem>>, vector<2x8x32xf32>
    %c0_4 = arith.constant 0 : index
    %c0_5 = arith.constant 0 : index
    %2 = vector.load %arg3[%c0_4, %c0_5] : memref<2x8xf32, #tpu.memory_space<vmem>>, vector<2x8xf32>
    %c0_6 = arith.constant 0 : index
    %c0_7 = arith.constant 0 : index
    %3 = vector.load %arg4[%c0_6, %c0_7] : memref<32x32xf32, #tpu.memory_space<vmem>>, vector<32x32xf32>
    %cst = arith.constant dense<0.000000e+00> : vector<2x32xf32>
    %4 = tpu.matmul %0, %3, %cst {dimension_numbers = #tpu.dot_dimension_numbers<[1], [0], [0], [1], [0, 0, 1, 1], [], []>} : vector<2x32xf32>, vector<32x32xf32>, vector<2x32xf32> -> vector<2x32xf32>
    %cst_8 = arith.constant 0.000000e+00 : f32
    %5 = vector.broadcast %cst_8 : f32 to vector<2x32xf32>
    %6 = arith.maximumf %4, %5 : vector<2x32xf32>
    %7 = vector.shape_cast %2 : vector<2x8xf32> to vector<2x8x1xf32>
    %8 = vector.broadcast %7 : vector<2x8x1xf32> to vector<2x8x32xf32>
    %9 = arith.mulf %1, %8 : vector<2x8x32xf32>
    %10 = vector.shape_cast %9 : vector<2x8x32xf32> to vector<16x32xf32>
    %cst_9 = arith.constant dense<0.000000e+00> : vector<16x32xf32>
    %11 = tpu.matmul %10, %3, %cst_9 {dimension_numbers = #tpu.dot_dimension_numbers<[1], [0], [0], [1], [0, 0, 1, 1], [], []>} : vector<16x32xf32>, vector<32x32xf32>, vector<16x32xf32> -> vector<16x32xf32>
    %cst_10 = arith.constant 0.000000e+00 : f32
    %12 = vector.broadcast %cst_10 : f32 to vector<16x32xf32>
    %13 = arith.maximumf %11, %12 : vector<16x32xf32>
    %14 = vector.shape_cast %13 : vector<16x32xf32> to vector<2x8x32xf32>
    %15 = vector.shape_cast %6 : vector<2x32xf32> to vector<2x1x32xf32>
    %16 = vector.broadcast %15 : vector<2x1x32xf32> to vector<2x8x32xf32>
    %17 = arith.mulf %16, %14 : vector<2x8x32xf32>
    %cst_11 = arith.constant dense<0.000000e+00> : vector<2x8xf32>
    %18 = vector.multi_reduction <add>, %17, %cst_11 [2] : vector<2x8x32xf32> to vector<2x8xf32>
    %cst_12 = arith.constant dense<0xFF800000> : vector<2xf32>
    %19 = vector.multi_reduction <maximumf>, %18, %cst_12 [1] : vector<2x8xf32> to vector<2xf32>
    %20 = vector.shape_cast %19 : vector<2xf32> to vector<2x1xf32>
    %21 = vector.broadcast %20 : vector<2x1xf32> to vector<2x8xf32>
    %22 = arith.subf %18, %21 : vector<2x8xf32>
    %23 = math.exp %22 : vector<2x8xf32>
    %cst_13 = arith.constant dense<0.000000e+00> : vector<2xf32>
    %24 = vector.multi_reduction <add>, %23, %cst_13 [1] : vector<2x8xf32> to vector<2xf32>
    %25 = vector.shape_cast %24 : vector<2xf32> to vector<2x1xf32>
    %26 = vector.broadcast %25 : vector<2x1xf32> to vector<2x8xf32>
    %27 = arith.divf %23, %26 : vector<2x8xf32>
    %28 = vector.shape_cast %27 : vector<2x8xf32> to vector<2x8x1xf32>
    %29 = vector.broadcast %28 : vector<2x8x1xf32> to vector<2x8x32xf32>
    %30 = arith.mulf %29, %1 : vector<2x8x32xf32>
    %cst_14 = arith.constant dense<0.000000e+00> : vector<2x32xf32>
    %31 = vector.multi_reduction <add>, %30, %cst_14 [1] : vector<2x8x32xf32> to vector<2x32xf32>
    %c0_15 = arith.constant 0 : index
    %c0_16 = arith.constant 0 : index
    %32 = vector.load %arg5[%c0_15, %c0_16] : memref<2x64xf32, #tpu.memory_space<vmem>>, vector<2x32xf32>
    tpu.vector_store %arg5[%c0_15, %c0_16], %0 {strides = array<i32>} : memref<2x64xf32, #tpu.memory_space<vmem>>, vector<2x32xf32>,
    %c0_17 = arith.constant 0 : index
    %c32 = arith.constant 32 : index
    %33 = vector.load %arg5[%c0_17, %c32] : memref<2x64xf32, #tpu.memory_space<vmem>>, vector<2x32xf32>
    tpu.vector_store %arg5[%c0_17, %c32], %31 {strides = array<i32>} : memref<2x64xf32, #tpu.memory_space<vmem>>, vector<2x32xf32>,
    %c0_18 = arith.constant 0 : index
    %c0_19 = arith.constant 0 : index
    %34 = vector.load %arg6[%c0_18, %c0_19] : memref<2x32xf32, #tpu.memory_space<vmem>>, vector<2x32xf32>
    tpu.vector_store %arg6[%c0_18, %c0_19], %31 {strides = array<i32>} : memref<2x32xf32, #tpu.memory_space<vmem>>, vector<2x32xf32>,
    return
  }
  func.func @transform_0(%arg0: i32) -> (i32, i32) {
    %c0_i32 = arith.constant 0 : i32
    %c0_i32_0 = arith.constant 0 : i32
    return %arg0, %c0_i32 : i32, i32
  }
  func.func @transform_1(%arg0: i32) -> (i32, i32, i32) {
    %c0_i32 = arith.constant 0 : i32
    %c0_i32_0 = arith.constant 0 : i32
    %c0_i32_1 = arith.constant 0 : i32
    return %arg0, %c0_i32, %c0_i32_0 : i32, i32, i32
  }
  func.func @transform_2(%arg0: i32) -> (i32, i32) {
    %c0_i32 = arith.constant 0 : i32
    %c0_i32_0 = arith.constant 0 : i32
    return %arg0, %c0_i32 : i32, i32
  }
  func.func @transform_3(%arg0: i32) -> (i32, i32) {
    %c0_i32 = arith.constant 0 : i32
    %c0_i32_0 = arith.constant 0 : i32
    %c0_i32_1 = arith.constant 0 : i32
    return %c0_i32, %c0_i32_0 : i32, i32
  }
  func.func @transform_4(%arg0: i32) -> (i32, i32) {
    %c0_i32 = arith.constant 0 : i32
    %c0_i32_0 = arith.constant 0 : i32
    return %arg0, %c0_i32 : i32, i32
  }
  func.func @transform_5(%arg0: i32) -> (i32, i32) {
    %c0_i32 = arith.constant 0 : i32
    %c0_i32_0 = arith.constant 0 : i32
    return %arg0, %c0_i32 : i32, i32
  }
}

</mosaic_0001>

<bundles_post_ra>
// kernel: tpu_custom_call.1
= control target key start
LH: loop header
LB: loop body
LE: loop exit
PB: predicated region body
PF: predicated region fallthrough
CT: control target
= control target key end

     0   :  { %11 = vsyncpa [#allocation3], 0  ;;  %s584_s0 = inlined_call_operand.hbm [shape: f32[2,32], index: 0, kind: input, shape index: {}]   ;;  %s585_s1 = inlined_call_operand.hbm [shape: f32[2,8,32], index: 1, kind: input, shape index: {}]   ;;  %s586_s2 = inlined_call_operand.hbm [shape: f32[2,8], index: 2, kind: input, shape index: {}]   ;;  %s587_s3 = inlined_call_operand.hbm [shape: f32[32,32], index: 3, kind: input, shape index: {}]   ;;  %s588_s4 = inlined_call_operand.hbm [shape: f32[2,64], index: 4, kind: output, shape index: {0}]   ;;  %s589_s5 = inlined_call_operand.hbm [shape: f32[2,32], index: 5, kind: output, shape index: {1}]  }
   0x1   :  { %12 = vsyncpa [#allocation6], 0 }
   0x2   :  { %13 = vsyncpa [#allocation9], 0 }
   0x3   :  { %14 = vsyncpa [#allocation4], 0  ;;  %s31_s20 = sshll.u32 %s585_s1, 4  ;;  %s32_s20 = int_to_ptr.hbm [resolvable:$true] %s31_s20 }
   0x4   :  { %15 = vsyncpa [#allocation12], 0  ;;  %s504_s21 = smov [#allocation5]   ;;  %s21_s25 = sshll.u32 %s584_s0, 4  ;;  %s22_s25 = int_to_ptr.hbm [resolvable:$true] %s21_s25 }
   0x5   :  { %s33_s22 = sshll.u32 %s504_s21, 4  ;;  %s505_s26 = smov 128   ;;  %s34_s22 = int_to_ptr.vmem [resolvable:$true] %s33_s22 }
   0x6   :  { %s506_s27 = smov 8   ;;  %s507_s28 = smov [#allocation2]  }
   0x7   :  { %39 = dma.hbm_to_vmem [thread:$0]  %s32_s20, 256, %s34_s22, [#allocation6], %s505_s26, %s505_s26, %s506_s27  }
   0x8   :  { %s23_s29 = sshll.u32 %s507_s28, 4  ;;  %s45_s7 = sshll.u32 %s586_s2, 4  ;;  %s24_s29 = int_to_ptr.vmem [resolvable:$true] %s23_s29  ;;  %s46_s7 = int_to_ptr.hbm [resolvable:$true] %s45_s7 }
   0x9   :  { %26 = dma.hbm_to_vmem [thread:$0]  %s22_s25, 32, %s24_s29, [#allocation3]  }
   0xa   :  { %s55_s9 = sshll.u32 %s587_s3, 4  ;;  %s508_s10 = smov [#allocation7]   ;;  %s56_s9 = int_to_ptr.hbm [resolvable:$true] %s55_s9 }
   0xb   :  { %s47_s11 = sshll.u32 %s508_s10, 4  ;;  %s509_s0 = smov [#allocation8]   ;;  %s48_s11 = int_to_ptr.vmem [resolvable:$true] %s47_s11 }
   0xc   :  { %50 = dma.hbm_to_vmem [thread:$0]  %s46_s7, 32, %s48_s11, [#allocation6]  }
   0xd   :  { %s57_s12 = sshll.u32 %s509_s0, 4  ;;  %s58_s12 = int_to_ptr.vmem [resolvable:$true] %s57_s12 }
   0xe   :  { %63 = dma.hbm_to_vmem [thread:$0]  %s56_s9, 512, %s58_s12, [#allocation9], %s505_s26, %s505_s26, %s506_s27  }
   0xf   :  { %494 = dma.done.wait [#allocation3], 32  }
  0x10   :  { %495 = vsyncadd [#allocation3], 4294967264 }
  0x11   :  { %496 = dma.done.wait [#allocation6], 288  }
  0x12   :  { %497 = vsyncadd [#allocation6], 4294967008 }
  0x13   :  { %498 = dma.done.wait [#allocation9], 512  }
  0x14   :  { %499 = vsyncadd [#allocation9], 4294966784  ;;  %v114_v0 = vlaneseq  ;;  %v83_v2 = vld [vmem:[#allocation7] sm:$0x3]  ;;  %v86_v4 = vld [vmem:[#allocation8 + $0x10] sm:$0xff]  ;;  %vm88_vm0 = vcmask 261120  }
  0x15   :  { %v87_v3 = vld [vmem:[#allocation8 + $0x18] sm:$0xff]  ;;  %v120_v5 = vperm.slane %v83_v2, 1  ;;  %v85_v6 = vld [vmem:[#allocation8 + $0x8] sm:$0xff]  ;;  %v113_v7 = vperm.slane %v83_v2, 0  ;;  %v84_v8 = vld [vmem:[#allocation8] sm:$0xff]  ;;  %vm274_vm1 = vcmask 254976  }
  0x16   :  { %v115_v1 = vshrl.u32 %v114_v0, 7  ;;  %324 = vmatpush.msra.mxu2 %v87_v3  ;;  %104 = vmatpush.msra.mxu0 %v87_v3  ;;  %v80_v9 = vld [vmem:[#allocation2] sm:$0x3]  ;;  %v558_v10 = vld [vmem:[#allocation5 + $0x8] sm:$0xff]  ;;  %v562_v13 = vld [vmem:[#allocation5] sm:$0xff]  ;;  %v177_v30 = vand.u32 127, %v114_v0 }
  0x17   :  { %147 = vmatpush.msra.mxu1 %v87_v3  ;;  %275 = vst.msk [vmem:[#allocation10] sm:$0x3] %vm274_vm1, %v80_v9  ;;  %vm180_vm2 = vcmask 1041409   ;;  %vm183_vm3 = vcmask 58368   ;;  %v510_v36 = vmov 0   ;;  %s511_s2 = smov [#allocation11]  }
  0x18   :  { %338 = vset.pattern.permute.xlu0 %v115_v1  ;;  %325 = vmatpush.msra.mxu2 %v86_v4  ;;  %s302_s3 = sshll.u32 %s511_s2, 4  ;;  %s304_s15 = sshll.u32 %s589_s5, 4  ;;  %vm282_vm12 = vcmask 517376   ;;  %s303_s3 = int_to_ptr.vmem [resolvable:$true] %s302_s3  ;;  %s305_s15 = int_to_ptr.hbm [resolvable:$true] %s304_s15 }
  0x19   :  { %105 = vmatpush.msra.mxu0 %v86_v4  ;;  %148 = vmatpush.msra.mxu1 %v86_v4  ;;  %s512_s16 = smov 32   ;;  %s513_s17 = smov [#allocation10]  }
  0x1a   :  { %326 = vmatpush.msra.mxu2 %v85_v6  ;;  %339 = vset.pattern.permute.xlu2 %v510_v36  ;;  %s291_s18 = sshll.u32 %s513_s17, 4  ;;  %s293_s21 = sshll.u32 %s588_s4, 4  ;;  %s292_s18 = int_to_ptr.vmem [resolvable:$true] %s291_s18  ;;  %s294_s21 = int_to_ptr.hbm [resolvable:$true] %s293_s21 }
  0x1b   :  { %106 = vmatpush.msra.mxu0 %v85_v6  ;;  %149 = vmatpush.msra.mxu1 %v85_v6 }
  0x1c   :  { %327 = vmatpush.msra.mxu2 %v84_v8  ;;  %341 = vset.pattern.permute.xlu1 %v510_v36 }
  0x1d   :  { %107 = vmatpush.msra.mxu0 %v84_v8  ;;  %150 = vmatpush.msra.mxu1 %v84_v8 }
  0x1e   :  { %321 = vmatmul.msk.f32.vlgmr.msra.gmra.mxu0 %vm88_vm0, %v80_v9 }
  0x20   :  { %125 = vperm.xlu0 %338, %v120_v5  }
  0x28   :  { %118 = vperm.xlu0 %338, %v113_v7  }
  0x30   :  { %340 = vset.pattern.permute.xlu0 %v510_v36 }
  0x92   :  { %v126_v11 = vpop.permute.xlu0 %125 }
  0x93   :  { %v128_v12 = vmul.f32 %v126_v11, %v558_v10 }
  0x95   :  { %323 = vmatmul.msk.f32.vlgmr.msra.gmra.mxu2 %vm88_vm0, %v128_v12 }
  0x9a   :  { %v119_v14 = vpop.permute.xlu0 %118 }
  0x9b   :  { %v127_v15 = vmul.f32 %v119_v14, %v562_v13  ;;  %v109_v16 = vpop.f32.mrf.mxu0 }
  0x9c   :  { %v112_v17 = vmax.f32 %v109_v16, 0.0 }
  0x9d   :  { %322 = vmatmul.msk.f32.vlgmr.msra.gmra.mxu1 %vm88_vm0, %v127_v15 }
  0x9e   :  { %v162_v18 = vperm.slane %v112_v17, 0  ;;  %v161_v20 = vrot.slane %v112_v17, 1 }
  0xa0   :  { %v163_v24 = vperm.slane %v161_v20, 0 }
 0x118   :  { %v155_v22 = vpop.f32.mrf.mxu2 }
 0x119   :  { %v159_v25 = vmax.f32 %v155_v22, 0.0 }
 0x11a   :  { %v152_v19 = vpop.f32.mrf.mxu1 }
 0x11b   :  { %v158_v21 = vmax.f32 %v152_v19, 0.0  ;;  %v167_v27 = vmul.f32 %v163_v24, %v159_v25 }
 0x11d   :  { %v166_v23 = vmul.f32 %v162_v18, %v158_v21  ;;  %v171_v28 = vsel %vm88_vm0, %v167_v27, 0.0 }
 0x11f   :  { %v168_v26 = vsel %vm88_vm0, %v166_v23, 0.0 }
 0x120   :  { %169 = vadd.xlane.f32.xlu1 %v168_v26 }
 0x128   :  { %172 = vadd.xlane.f32.xlu1 %v171_v28 }
 0x193   :  { %v170_v29 = vpop.xlane.xlu1 %169 }
 0x194   :  { %v178_v32 = vperm.slane %v170_v29, %v177_v30 }
 0x19b   :  { %v173_v31 = vpop.xlane.xlu1 %172 }
 0x19c   :  { %v179_v33 = vperm.slane %v173_v31, %v177_v30 }
 0x19e   :  { %v181_v34 = vsel %vm180_vm2, %v179_v33, %v178_v32 }
 0x19f   :  { %v184_v35 = vsel %vm183_vm3, %v181_v34, -inf }
 0x1a0   :  { %185 = vmax.xlane.f32.xlu2 %v184_v35 }
 0x213   :  { %v186_v37 = vpop.xlane.xlu2 %185 }
 0x214   :  { %v188_v38 = vperm.slane %v186_v37, 0  ;;  %v189_v39 = vperm.slane %v186_v37, 1 }
 0x216   :  { %v192_v40 = vsub.f32 %v170_v29, %v188_v38  ;;  %v193_v41 = vsub.f32 %v173_v31, %v189_v39 }
 0x218   :  { %v194_v42 = vmul.f32 1.442695, %v192_v40  ;;  %v196_v43 = vmul.f32 1.442695, %v193_v41 }
 0x21a   :  { %342 = vpow2.f32 %v194_v42 }
 0x21b   :  { %344 = vpow2.f32 %v196_v43 }
 0x220   :  { %v343_v44 = vpop.eup %342 }
 0x221   :  { %v345_v45 = vpop.eup %344  ;;  %201 = vperm.xlu2 %339, %v343_v44  }
 0x222   :  { %204 = vperm.xlu0 %340, %v345_v45  }
 0x27b   :  { %v202_v46 = vpop.permute.xlu2 %201 }
 0x27c   :  { %v206_v48 = vperm.slane %v202_v46, %v177_v30 }
 0x294   :  { %v205_v47 = vpop.permute.xlu0 %204 }
 0x295   :  { %v207_v49 = vperm.slane %v205_v47, %v177_v30 }
 0x297   :  { %v208_v50 = vsel %vm180_vm2, %v207_v49, %v206_v48 }
 0x298   :  { %v210_v51 = vsel %vm183_vm3, %v208_v50, 0.0 }
 0x299   :  { %211 = vadd.xlane.f32.xlu1 %v210_v51 }
 0x30c   :  { %v212_v52 = vpop.xlane.xlu1 %211 }
 0x30d   :  { %v214_v53 = vperm.slane %v212_v52, 0  ;;  %v215_v54 = vperm.slane %v212_v52, 1 }
 0x30f   :  { %346 = vrcp.f32 %v214_v53  ;;  %v229_v61 = vand.u32 2147483648, %v214_v53  ;;  %v244_v62 = vand.u32 2147483648, %v215_v54  ;;  %v227_v0 = vand.u32 2147483647, %v214_v53 }
 0x310   :  { %348 = vrcp.f32 %v215_v54  ;;  %v242_v2 = vand.u32 2147483647, %v215_v54  ;;  %vm223_vm6 = vweird.f32 %v214_v53  ;;  %vm238_vm7 = vweird.f32 %v215_v54 }
 0x311   :  { %v230_v5 = vor.u32 1.1754944e-38, %v229_v61  ;;  %v245_v6 = vor.u32 1.1754944e-38, %v244_v62  ;;  %vm228_vm10 = vcmp.eq.f32.partialorder %v227_v0, 8.507059e+37 }
 0x312   :  { %vm243_vm11 = vcmp.eq.f32.partialorder %v242_v2, 8.507059e+37 }
 0x315   :  { %v347_v55 = vpop.eup %346 }
 0x316   :  { %v349_v56 = vpop.eup %348  ;;  %v219_v57 = vmul.f32 %v347_v55, %v214_v53  ;;  %vm224_vm4 = vweird.f32 %v347_v55 }
 0x317   :  { %v234_v58 = vmul.f32 %v349_v56, %v215_v54  ;;  %vm239_vm5 = vweird.f32 %v349_v56  ;;  %vm225_vm8 = vmor %vm223_vm6, %vm224_vm4 }
 0x318   :  { %v220_v59 = vsub.f32 1.0, %v219_v57  ;;  %vm240_vm9 = vmor %vm238_vm7, %vm239_vm5 }
 0x319   :  { %v235_v60 = vsub.f32 1.0, %v234_v58 }
 0x31a   :  { %v221_v63 = vmul.f32 %v347_v55, %v220_v59 }
 0x31b   :  { %v236_v1 = vmul.f32 %v349_v56, %v235_v60 }
 0x31c   :  { %v222_v3 = vadd.f32 %v347_v55, %v221_v63 }
 0x31d   :  { %v237_v4 = vadd.f32 %v349_v56, %v236_v1 }
 0x31e   :  { %v226_v7 = vsel %vm225_vm8, %v347_v55, %v222_v3 }
 0x31f   :  { %v241_v8 = vsel %vm240_vm9, %v349_v56, %v237_v4  ;;  %v231_v9 = vsel %vm228_vm10, %v230_v5, %v226_v7 }
 0x320   :  { %v246_v11 = vsel %vm243_vm11, %v245_v6, %v241_v8  ;;  %v232_v12 = vmul.f32 %v343_v44, %v231_v9 }
 0x321   :  { %v247_v14 = vmul.f32 %v345_v45, %v246_v11 }
 0x322   :  { %250 = vperm.xlu1 %341, %v232_v12  }
 0x323   :  { %255 = vperm.xlu0 %340, %v247_v14  }
 0x394   :  { %v251_v15 = vpop.permute.xlu1 %250 }
 0x395   :  { %v256_v16 = vpop.permute.xlu0 %255  ;;  %v258_v17 = vmul.f32 %v251_v15, %v562_v13 }
 0x396   :  { %v259_v18 = vmul.f32 %v256_v16, %v558_v10 }
 0x397   :  { %v260_v19 = vsel %vm88_vm0, %v258_v17, 0.0 }
 0x398   :  { %v267_v20 = vsel %vm88_vm0, %v259_v18, 0.0  ;;  %v261_v21 = vrot.slane %v260_v19, 4 }
 0x399   :  { %v268_v22 = vrot.slane %v267_v20, 4 }
 0x39a   :  { %v262_v23 = vadd.f32 %v261_v21, %v260_v19 }
 0x39b   :  { %v269_v24 = vadd.f32 %v268_v22, %v267_v20 }
 0x39c   :  { %v263_v25 = vrot.slane %v262_v23, 2 }
 0x39d   :  { %v270_v26 = vrot.slane %v269_v24, 2 }
 0x39e   :  { %v264_v27 = vadd.f32 %v263_v25, %v262_v23 }
 0x39f   :  { %v271_v28 = vadd.f32 %v270_v26, %v269_v24 }
 0x3a0   :  { %v265_v29 = vrot.slane %v264_v27, 1 }
 0x3a1   :  { %v272_v30 = vrot.slane %v271_v28, 1 }
 0x3a2   :  { %v266_v10 = vadd.f32 %v265_v29, %v264_v27 }
 0x3a3   :  { %v273_v13 = vadd.f32 %v272_v30, %v271_v28 }
 0x3a5   :  { %v278_v31 = vsel %vm180_vm2, %v273_v13, %v266_v10 }
 0x3a6   :  { %279 = vrot.lane.b32.xlu2 %v278_v31, %s512_s16  ;;  %285 = vst.msk [vmem:[#allocation11] sm:$0x3] %vm274_vm1, %v278_v31 }
 0x3a7   :  { %307 = dma.vmem_to_hbm [thread:$0]  %s303_s3, 32, %s305_s15, [#allocation12]  }
 0x400   :  { %v280_v32 = vpop.permute.xlu2 %279 }
 0x401   :  { %283 = vst.msk [vmem:[#allocation10] sm:$0x3] %vm282_vm12, %v280_v32 }
 0x402   :  { %296 = dma.vmem_to_hbm [thread:$0]  %s292_s18, 32, %s294_s21, [#allocation4]  }
 0x403   :  { %500 = dma.done.wait [#allocation4], 32  }
 0x404   :  { %501 = vsyncadd [#allocation4], 4294967264 }
 0x405   :  { %502 = dma.done.wait [#allocation12], 32  }
 0x406   :  { %503 = vsyncadd [#allocation12], 4294967264 }
 0x407   :  { %316 = vsyncpa [#allocation3], 1 }
 0x408   :  { %317 = vsyncpa [#allocation6], 1 }
 0x409   :  { %318 = vsyncpa [#allocation9], 1 }
 0x40a   :  { %319 = vsyncpa [#allocation4], 1 }
 0x40b   :  { %320 = vsyncpa [#allocation12], 1 }

</bundles_post_ra>
